<compile_context>
chip_gen: v6e
topology: v6e:2x2x1
jax: 0.10.0
libtpu: 0.0.40
codegen_flags: <defaults>
</compile_context>

<pallas_src>
import functools

import jax
import jax.numpy as jnp
from jax.experimental import pallas as pl
from jax.experimental.pallas import tpu as pltpu


def _ce2d_kernel(x_ref, t_ref, out_ref, *, tile_hw, hw, need_mask):
    # x_ref:   (1, C, tile_hw) logits (class-major, pixels on lanes)
    # t_ref:   (1, 1, tile_hw) integer targets
    # out_ref: (1, 1, 8, 128)  per-block partial-sum tile (scalar splatted)
    c = x_ref.shape[1]
    x = x_ref[0].astype(jnp.float32)                 # (C, tile_hw)
    t = t_ref[0].astype(jnp.int32)                   # (1, tile_hw)

    # Numerically stable log-softmax along the class (sublane) axis.
    m = jnp.max(x, axis=0, keepdims=True)                                # (1, tile_hw)
    lse = m + jnp.log(jnp.sum(jnp.exp(x - m), axis=0, keepdims=True))    # (1, tile_hw)

    # Pick x[target, pixel] via a one-hot compare along classes (no gather).
    # The iota is (C, 1): no (C, tile_hw) int32 temporary is materialized.
    cls = jax.lax.broadcasted_iota(jnp.int32, (c, 1), 0)                 # (C, 1)
    x_t = jnp.sum(jnp.where(cls == t, x, 0.0), axis=0, keepdims=True)    # (1, tile_hw)

    nll = lse - x_t                                                      # (1, tile_hw)

    if need_mask:
        # Only the tail block pays the column mask; masking happens strictly
        # BEFORE the cross-column sum, so OOB garbage (even NaN/Inf) is dropped.
        j = pl.program_id(1)

        def _tail_sum(v):
            col = j * tile_hw + jax.lax.broadcasted_iota(jnp.int32, v.shape, 1)
            return jnp.sum(jnp.where(col < hw, v, 0.0))

        s = jax.lax.cond(j == pl.num_programs(1) - 1,
                         _tail_sum, lambda v: jnp.sum(v), nll)
    else:
        s = jnp.sum(nll)

    # Splat the scalar partial across a lane-dense (8, 128) tile -> unmasked store.
    out_ref[...] = jnp.broadcast_to(s, (1, 1, 8, 128))


def _round_up(a, b):
    return -(-a // b) * b


def _physical_vmem_bytes():
    """Per-TensorCore VMEM capacity (64 MiB on v7x, 128 MiB on v5e/v6e)."""
    try:
        info = pltpu.get_tpu_info()
        for attr in ("vmem_capacity_bytes", "vmem_bytes", "vmem_size_bytes"):
            v = getattr(info, attr, None)
            if v:
                return int(v)
    except Exception:
        pass
    return 64 * 1024 * 1024   # conservative fallback: fits every generation


def _pick_tile_hw(c, hw, x_itemsize, t_itemsize, vmem_limit_bytes):
    """Pixel-tile size derived from the full per-step VMEM working set, lane-aligned."""
    # Sublane tiling pads the class dim: f32 -> 8, bf16 -> 16, int8 -> 32.
    sub_x = max(8 * (4 // x_itemsize), 8)
    c_pad_x = _round_up(c, sub_x)
    c_pad_f32 = _round_up(c, 8)
    bytes_per_px = (
        2 * c_pad_x * x_itemsize      # double-buffered logits block (sublane-padded)
        + 2 * 8 * t_itemsize          # double-buffered targets block (padded to 8 sublanes)
        + 3 * c_pad_f32 * 4           # live f32 (C, tile) temporaries (x, exp, one-hot pick)
        + 6 * 8 * 4                   # live f32 (1, tile) rows (m / lse / x_t / nll / mask)
    )
    budget = int(vmem_limit_bytes * 0.70)   # headroom for compiler-internal scratch
    t = max(budget // bytes_per_px, 128)
    t = (t // 128) * 128
    if hw <= t:
        return hw                     # single full-extent block (always legal)
    # Prefer a lane-aligned tile that divides hw (no tail mask, no OOB tail DMA),
    # as long as it does not shrink the tile by more than 2x.
    d = t
    while d >= max(128, t // 2):
        if hw % d == 0:
            return d
        d -= 128
    return t


def cross_entropy_loss_2d(outputs, targets, *, tile_hw=None, vmem_limit_bytes=None):
    """outputs: (N, C, H, W) float logits; targets: (N, H, W) integer class ids.

    Returns scalar mean NLL(log_softmax(outputs, dim=1), targets), matching
    torch.nn.NLLLoss(weight=None, reduction='mean') on log_softmax(outputs, 1).
    """
    n, c, h, w = outputs.shape
    hw = h * w
    p = n * hw
    x_itemsize = outputs.dtype.itemsize

    # Free, contiguous reshape — no transpose, no pad, no dtype cast of the logits.
    x = outputs.reshape(n, c, hw)

    # Keep targets in their native (<=32-bit) integer dtype: no stray full-HBM
    # astype pass; the cheap upcast to int32 happens in-kernel.
    t = targets
    if (not jnp.issubdtype(t.dtype, jnp.integer)) or t.dtype.itemsize > 4:
        t = t.astype(jnp.int32)
    t_itemsize = t.dtype.itemsize
    t = t.reshape(n, 1, hw)

    if vmem_limit_bytes is None:
        phys = _physical_vmem_bytes()
        vmem_limit_bytes = min(phys * 3 // 4, 96 * 1024 * 1024)

    if tile_hw is None:
        tile_hw = _pick_tile_hw(c, hw, x_itemsize, t_itemsize, vmem_limit_bytes)
        # Guarantee >= 2 grid blocks when possible so a second TensorCore
        # (v7x megacore) always has work under ("parallel", "parallel").
        if n * pl.cdiv(hw, tile_hw) < 2 and hw > 128:
            tile_hw = min(_round_up((hw + 1) // 2, 128), hw)

    num_blocks = pl.cdiv(hw, tile_hw)
    need_mask = (hw % tile_hw) != 0

    kernel = functools.partial(
        _ce2d_kernel, tile_hw=tile_hw, hw=hw, need_mask=need_mask)

    partials = pl.pallas_call(
        kernel,
        out_shape=jax.ShapeDtypeStruct((n, num_blocks, 8, 128), jnp.float32),
        grid_spec=pltpu.PrefetchScalarGridSpec(
            num_scalar_prefetch=0,
            grid=(n, num_blocks),
            in_specs=[
                pl.BlockSpec((1, c, tile_hw), lambda i, j: (i, 0, j)),
                pl.BlockSpec((1, 1, tile_hw), lambda i, j: (i, 0, j)),
            ],
            out_specs=pl.BlockSpec((1, 1, 8, 128), lambda i, j: (i, j, 0, 0)),
        ),
        compiler_params=pltpu.CompilerParams(
            dimension_semantics=("parallel", "parallel"),
            vmem_limit_bytes=int(vmem_limit_bytes),
        ),
        cost_estimate=pl.CostEstimate(
            flops=6 * p * c,
            transcendentals=p * (c + 1),
            bytes_accessed=(p * c * x_itemsize + p * t_itemsize
                            + n * num_blocks * 8 * 128 * 4),
        ),
    )(x, t)

    # Each block splats its partial sum across its (8,128) tile; read one element
    # per block and finish the sum + mean in JAX (tiny reduction).
    return jnp.sum(partials[:, :, 0, 0]) / jnp.float32(p)


def _reference(outputs, targets):
    # pure-JAX reference of F.nll_loss(F.log_softmax(outputs, dim=1), targets)
    logp = jax.nn.log_softmax(outputs.astype(jnp.float32), axis=1)
    t = targets.astype(jnp.int32)
    picked = jnp.take_along_axis(logp, t[:, None, :, :], axis=1)[:, 0]
    return -jnp.mean(picked)


if __name__ == "__main__":
    key = jax.random.PRNGKey(0)
    k1, k2 = jax.random.split(key)

    N, C, H, W = 2, 4, 16, 16
    outputs = jax.random.normal(k1, (N, C, H, W), dtype=jnp.float32)
    targets = jax.random.randint(k2, (N, H, W), 0, C, dtype=jnp.int32)

    loss = cross_entropy_loss_2d(outputs, targets)
    jax.block_until_ready(loss)

    ref = _reference(outputs, targets)
    assert jnp.allclose(loss, ref, rtol=1e-5, atol=1e-5), (loss, ref)

    print("KERNEL_OK")
</pallas_src>

<mosaic_0001>
module attributes {stable_mosaic.version = 11 : i64} {
  func.func @_ce2d_kernel(%arg0: i32, %arg1: i32, %arg2: memref<1x4x256xf32, #tpu.memory_space<vmem>>, %arg3: memref<1x1x256xi32, #tpu.memory_space<vmem>>, %arg4: memref<1x1x8x128xf32, #tpu.memory_space<vmem>>) attributes {dimension_semantics = [#tpu.dimension_semantics<parallel>, #tpu.dimension_semantics<parallel>], iteration_bounds = array<i64: 2, 1>, scalar_prefetch = 0 : i64, scratch_operands = 0 : i64, tpu.core_type = #tpu.core_type<tc>, window_params = [{transform_indices = @transform_0, window_bounds = array<i64: 1, 4, 256>}, {transform_indices = @transform_1, window_bounds = array<i64: 1, 1, 256>}, {transform_indices = @transform_2, window_bounds = array<i64: 1, 1, 8, 128>}]} {
    %c0 = arith.constant 0 : index
    %c0_0 = arith.constant 0 : index
    %c0_1 = arith.constant 0 : index
    %0 = vector.load %arg2[%c0, %c0_0, %c0_1] : memref<1x4x256xf32, #tpu.memory_space<vmem>>, vector<1x4x256xf32>
    %1 = vector.shape_cast %0 : vector<1x4x256xf32> to vector<4x256xf32>
    %c0_2 = arith.constant 0 : index
    %c0_3 = arith.constant 0 : index
    %c0_4 = arith.constant 0 : index
    %2 = vector.load %arg3[%c0_2, %c0_3, %c0_4] : memref<1x1x256xi32, #tpu.memory_space<vmem>>, vector<1x1x256xi32>
    %3 = vector.shape_cast %2 : vector<1x1x256xi32> to vector<1x256xi32>
    %cst = arith.constant dense<0xFF800000> : vector<256xf32>
    %4 = vector.multi_reduction <maximumf>, %1, %cst [0] : vector<4x256xf32> to vector<256xf32>
    %5 = vector.shape_cast %4 : vector<256xf32> to vector<1x256xf32>
    %6 = vector.broadcast %5 : vector<1x256xf32> to vector<4x256xf32>
    %7 = arith.subf %1, %6 : vector<4x256xf32>
    %8 = math.exp %7 : vector<4x256xf32>
    %cst_5 = arith.constant dense<0.000000e+00> : vector<256xf32>
    %9 = vector.multi_reduction <add>, %8, %cst_5 [0] : vector<4x256xf32> to vector<256xf32>
    %10 = vector.shape_cast %9 : vector<256xf32> to vector<1x256xf32>
    %11 = math.log %10 : vector<1x256xf32>
    %12 = arith.addf %5, %11 : vector<1x256xf32>
    %13 = tpu.iota {dimensions = array<i32: 0>} : vector<4x1xi32>
    %14 = vector.broadcast %13 : vector<4x1xi32> to vector<4x256xi32>
    %15 = vector.broadcast %3 : vector<1x256xi32> to vector<4x256xi32>
    %16 = arith.cmpi eq, %14, %15 : vector<4x256xi32>
    %cst_6 = arith.constant 0.000000e+00 : f32
    %17 = vector.broadcast %cst_6 : f32 to vector<4x256xf32>
    %18 = arith.select %16, %1, %17 : vector<4x256xi1>, vector<4x256xf32>
    %cst_7 = arith.constant dense<0.000000e+00> : vector<256xf32>
    %19 = vector.multi_reduction <add>, %18, %cst_7 [0] : vector<4x256xf32> to vector<256xf32>
    %20 = vector.shape_cast %19 : vector<256xf32> to vector<1x256xf32>
    %21 = arith.subf %12, %20 : vector<1x256xf32>
    %22 = vector.shape_cast %21 : vector<1x256xf32> to vector<1x1x256xf32>
    %cst_8 = arith.constant dense<0.000000e+00> : vector<1xf32>
    %23 = vector.multi_reduction <add>, %22, %cst_8 [1, 2] : vector<1x1x256xf32> to vector<1xf32>
    %24 = vector.shape_cast %23 : vector<1xf32> to vector<1x1x1xf32>
    %25 = vector.extract %24[0, 0, 0] : f32 from vector<1x1x1xf32>
    %26 = vector.broadcast %25 : f32 to vector<1x1x8x128xf32>
    %c0_9 = arith.constant 0 : index
    %c0_10 = arith.constant 0 : index
    %c0_11 = arith.constant 0 : index
    %c0_12 = arith.constant 0 : index
    %27 = vector.load %arg4[%c0_9, %c0_10, %c0_11, %c0_12] : memref<1x1x8x128xf32, #tpu.memory_space<vmem>>, vector<1x1x8x128xf32>
    tpu.vector_store %arg4[%c0_9, %c0_10, %c0_11, %c0_12], %26 {strides = array<i32>} : memref<1x1x8x128xf32, #tpu.memory_space<vmem>>, vector<1x1x8x128xf32>,
    return
  }
  func.func @transform_0(%arg0: i32, %arg1: i32) -> (i32, i32, i32) {
    %c0_i32 = arith.constant 0 : i32
    %c0_i32_0 = arith.constant 0 : i32
    return %arg0, %c0_i32, %arg1 : i32, i32, i32
  }
  func.func @transform_1(%arg0: i32, %arg1: i32) -> (i32, i32, i32) {
    %c0_i32 = arith.constant 0 : i32
    %c0_i32_0 = arith.constant 0 : i32
    return %arg0, %c0_i32, %arg1 : i32, i32, i32
  }
  func.func @transform_2(%arg0: i32, %arg1: i32) -> (i32, i32, i32, i32) {
    %c0_i32 = arith.constant 0 : i32
    %c0_i32_0 = arith.constant 0 : i32
    %c0_i32_1 = arith.constant 0 : i32
    return %arg0, %arg1, %c0_i32, %c0_i32_0 : i32, i32, i32, i32
  }
}

</mosaic_0001>

<bundles_post_ra>
// kernel: tpu_custom_call.1
= control target key start
LH: loop header
LB: loop body
LE: loop exit
PB: predicated region body
PF: predicated region fallthrough
CT: control target
= control target key end

     0   :  { %7 = vsyncpa [#allocation3], 0  ;;  %s876_s0 = inlined_call_operand.hbm [shape: f32[2,4,256], index: 0, kind: input, shape index: {}]   ;;  %s877_s1 = inlined_call_operand.hbm [shape: s32[2,1,256], index: 1, kind: input, shape index: {}]   ;;  %s878_s2 = inlined_call_operand.hbm [shape: f32[2,1,8,128], index: 2, kind: output, shape index: {}]  }
   0x1   :  { %9 = vsyncpa [#allocation3 + $0x1], 0 }
   0x2   :  { %10 = vsyncpa [#allocation6], 0 }
   0x3   :  { %12 = vsyncpa [#allocation6 + $0x1], 0 }
   0x4   :  { %13 = vsyncpa [#allocation4], 0 }
   0x5   :  { %15 = vsyncpa [#allocation4 + $0x1], 0  ;;  %s696_s9 = smov 0   ;;  %s698_s10 = smov 0  }
   0x6   :  { %s700_s11 = smov 0   ;;  %s702_s12 = smov 0  }
   0x7   :  { %s704_s13 = smov 0   ;;  %s706_s14 = smov 0  }
   0x8 LB: > { %s440_s15 = sadd.s32 4294967295, %s676_s14   ;;  %s441_s16 = sadd.s32 4294967294, %s676_s14   ;;  %s676_s14 = sphi %s706_s14, %s21_s14   ;;  %s672_s13 = sphi %s704_s13, %s890_s13   ;;  %s668_s12 = sphi %s702_s12, %s889_s12   ;;  %s664_s11 = sphi %s700_s11, %s888_s11   ;;  %s660_s10 = sphi %s698_s10, %s887_s10   ;;  %s656_s9 = sphi %s696_s9, %s886_s9  }
   0x9   : > { %s33_s17 = sadd.s32 1, %s672_s13  ;;  %s42_s18 = sadd.s32 1, %s664_s11 }
   0xa   : > { %p35_p0 = scmp.ge.s32.totalorder %s33_s17, 2  ;;  %p49_p1 = scmp.ne.s32.totalorder %s664_s11, %s660_s10 }
   0xb   : > { %p50_p2 = scmp.eq.s32.totalorder %s676_s14, 0  ;;  %p55_p3 = scmp.ne.s32.totalorder %s660_s10, %s656_s9 }
   0xc   : > { %s892_s17 = smov (%p35_p0, %s33_s17), 0  ;;  %p56_p5 = scmp.eq.s32.totalorder %s440_s15, 0 }
   0xd   : > { %p737_p4 = por %p50_p2, %p49_p1  ;;  %s37_s20 = ssub.s32 %s672_s13, %s892_s17 }
   0xe   : > { %p109_p6 = scmp.eq.s32.totalorder %s440_s15, 1  ;;  %p40_p7 = scmp.eq.s32.totalorder %s37_s20, 0 }
   0xf   : > { %p743_p8 = por %p56_p5, %p55_p3  ;;  %p115_p10 = scmp.eq.s32.totalorder %s441_s16, 1 }
  0x10   : > { %p747_p9 = por %p109_p6, %p49_p1  ;;  %p479_p13 = scmp.lt.s32.totalorder %s676_s14, 2 }
  0x11   : > { %s752_s23 = scalar_select %p40_p7, %s664_s11, %s42_s18  }
  0x12   : > { %p754_p11 = por %p115_p10, %p55_p3  ;;  %s761_s25 = sand.u32 1, %s664_s11  }
  0x13   : > { %s444_s26 = sshll.u32 %s761_s25, 3  ;;  %s458_s27 = sshll.u32 %s672_s13, 7 }
  0x14   : > { %s147_s30 = scalar_lea.hbm %s876_s0, %s458_s27  ;;  %s139_s3 = scalar_lea.vmem [#allocation2], %s444_s26 }
  0x15   : > { %s149_s4 = sshll.u32 %s139_s3, 4  ;;  %p770_p0 = pnand %p479_p13, %p737_p4  ;;  %s150_s4 = int_to_ptr.vmem [resolvable:$true] %s149_s4 }
  0x16   : > { %p450_p1 = scmp.ge.s32.totalorder %s676_s14, 1  ;;  %p175_p2 = scmp.lt.s32.totalorder %s676_s14, 3 }
  0x17   : > { %s136_s6 = scalar_lea.sflag [#allocation3], %s761_s25  ;;  %p538_p3 = pneg %p770_p0 }
  0x18   : > { %s549_s7 = scalar_lea.vmem %s150_s4, 128  ;;  %s678_s8 = smov [#allocation2]  }
  0x19   : > { %p550_p5 = scmp.ne.s32.totalorder %s150_s4, %s549_s7  ;;  %s554_s15 = sshll.u32 %s678_s8, 4  ;;  %s555_s15 = int_to_ptr.vmem [resolvable:$false] %s554_s15 }
  0x1a   : > { %s556_s16 = scalar_lea.vmem %s555_s15, 256  ;;  %p557_p4 = scmp.lt.s32.totalorder %s150_s4, %s555_s15 }
  0x1b   : > { %p552_p6 = pnand %p550_p5, %p538_p3  ;;  %p558_p10 = scmp.lt.s32.totalorder %s556_s16, %s549_s7 }
  0x1d   : > { %p553_p7 = pneg %p552_p6  ;;  %p559_p13 = por %p558_p10, %p557_p4 }
  0x1f   : > { %p560_p12 = pnand %p559_p13, %p553_p7 }
  0x21   : > { %563 = shalt.err (!%p560_p12)
}
  0x22   : > { %471 = dma.hbm_to_vmem [thread:$0]  (!%p770_p0), %s147_s30, 128, %s150_s4, %s136_s6  }
  0x23   : > { %p788_p5 = pnand %p450_p1, %p175_p2  ;;  %s447_s19 = sshll.u32 %s761_s25, 1 }
  0x24   : > { %s459_s20 = sshll.u32 %s672_s13, 5  ;;  %s160_s29 = scalar_lea.vmem [#allocation5], %s447_s19 }
  0x25   : > { %s168_s28 = scalar_lea.hbm %s877_s1, %s459_s20  ;;  %s170_s3 = sshll.u32 %s160_s29, 4  ;;  %s171_s3 = int_to_ptr.vmem [resolvable:$true] %s170_s3 }
  0x26   : > { %s157_s7 = scalar_lea.sflag [#allocation6], %s761_s25  ;;  %s577_s8 = scalar_lea.vmem %s171_s3, 32 }
  0x27   : > { %p578_p12 = scmp.ne.s32.totalorder %s171_s3, %s577_s8  ;;  %s679_s30 = smov [#allocation5]  }
  0x28   : > { %s582_s4 = sshll.u32 %s679_s30, 4  ;;  %s583_s4 = int_to_ptr.vmem [resolvable:$false] %s582_s4 }
  0x29   : > { %p580_p6 = pnand %p578_p12, %p538_p3  ;;  %s584_s6 = scalar_lea.vmem %s583_s4, 64 }
  0x2a   : > { %p585_p1 = scmp.lt.s32.totalorder %s171_s3, %s583_s4  ;;  %p586_p2 = scmp.lt.s32.totalorder %s584_s6, %s577_s8 }
  0x2b   : > { %p581_p7 = pneg %p580_p6 }
  0x2c   : > { %p587_p4 = por %p586_p2, %p585_p1 }
  0x2e   : > { %p588_p10 = pnand %p587_p4, %p581_p7 }
  0x30   : > { %591 = shalt.err (!%p588_p10)
}
  0x31   : > { %474 = dma.hbm_to_vmem [thread:$0]  (!%p770_p0), %s168_s28, 32, %s171_s3, %s157_s7  }
  0x32   : > { %179 = sbr.rel (%p788_p5) target bundleno = 347 (0x15b), region = 28  ;;  %s806_s25 = sand.u32 (!%p788_p5), 1, %s660_s10  }
  0x33   : > { %s451_s15 = sshll.u32 (!%p788_p5), %s806_s25, 3  ;;  %s182_s16 = scalar_lea.sflag (!%p788_p5), [#allocation3], %s806_s25 }
  0x34   : > { %s185_s19 = scalar_lea.vmem (!%p788_p5), [#allocation2], %s451_s15 }
  0x37   : > { %643 = dma.done.wait (%p743_p8), %s182_s16, 128  }
  0x38   : > { %645 = vsyncadd (%p743_p8), %s182_s16, 4294967168  ;;  %s452_s5 = sshll.u32 %s806_s25, 1  ;;  %s191_s18 = scalar_lea.sflag [#allocation6], %s806_s25 }
  0x39   : > { %s194_s20 = scalar_lea.vmem [#allocation5], %s452_s5 }
  0x3a   : > { %647 = dma.done.wait (%p743_p8), %s191_s18, 32  }
  0x3b   : > { %649 = vsyncadd (%p743_p8), %s191_s18, 4294967264  ;;  %vm227_vm0 = vcmask 1043456   ;;  %v222_v0 = vld [vmem:[%s185_s19] sm:$0xff]  ;;  %v272_v18 = vlaneseq  ;;  %v223_v22 = vld [vmem:[%s194_s20] sm:$0x3]  ;;  %vm302_vm3 = vcmask 1040384  }
  0x3c   : > { %v225_v1 = vcombine.high %v222_v0, %v222_v0  ;;  %v228_v2 = vsel %vm227_vm0, %v222_v0, -inf  ;;  %s219_s21 = scalar_lea.vmem [#allocation7], %s451_s15  ;;  %s455_s27 = sshll.u32 %s668_s12, 7 }
  0x3d   : > { %v229_v3 = vrot.slane %v228_v2, 4  ;;  %v273_v20 = vshrl.u32 %v272_v18, 7  ;;  %s332_s26 = sshll.u32 %s219_s21, 4  ;;  %s330_s7 = scalar_lea.hbm %s878_s2, %s455_s27  ;;  %s831_s26 = int_to_ptr.vmem [resolvable:$true] %s332_s26 }
  0x3e   : > { %v235_v4 = vsel %vm227_vm0, %v225_v1, -inf  ;;  %s318_s8 = scalar_lea.sflag [#allocation4], %s806_s25  ;;  %s592_s30 = scalar_lea.vmem %s831_s26, 128 }
  0x3f   : > { %v230_v5 = vmax.f32 %v228_v2, %v229_v3  ;;  %v236_v6 = vrot.slane %v235_v4, 4  ;;  %v276_v21 = vsub.s32 0, %v273_v20  ;;  %v280_v23 = vsub.s32 1, %v273_v20  ;;  %p593_p8 = scmp.ne.s32.totalorder %s831_s26, %s592_s30  ;;  %s680_s4 = smov [#allocation7]  }
  0x40   : > { %s596_s12 = sshll.u32 %s680_s4, 4  ;;  %s597_s12 = int_to_ptr.vmem [resolvable:$false] %s596_s12 }
  0x41   : > { %v231_v7 = vrot.slane %v230_v5, 2  ;;  %v237_v8 = vmax.f32 %v235_v4, %v236_v6  ;;  %v277_v24 = vrot.slane %v223_v22, %v276_v21  ;;  %v281_v25 = vrot.slane %v223_v22, %v280_v23  ;;  %p594_p0 = pnand %p593_p8, %p747_p9  ;;  %s598_s6 = scalar_lea.vmem %s597_s12, 256 }
  0x42   : > { %p599_p13 = scmp.lt.s32.totalorder %s831_s26, %s597_s12  ;;  %p600_p5 = scmp.lt.s32.totalorder %s598_s6, %s592_s30 }
  0x43   : > { %v232_v9 = vmax.f32 %v230_v5, %v231_v7  ;;  %v238_v10 = vrot.slane %v237_v8, 2  ;;  %vm282_vm1 = vcmp.eq.s32.totalorder %v273_v20, %v277_v24  ;;  %vm283_vm2 = vcmp.eq.s32.totalorder %v273_v20, %v281_v25  ;;  %p595_p3 = pneg %p594_p0 }
  0x44   : > { %v284_v30 = vsel %vm282_vm1, %v222_v0, 0.0  ;;  %v285_v34 = vsel %vm283_vm2, %v225_v1, 0.0  ;;  %p601_p12 = por %p600_p5, %p599_p13 }
  0x45   : > { %v233_v11 = vrot.slane %v232_v9, 1  ;;  %v239_v12 = vmax.f32 %v237_v8, %v238_v10  ;;  %v286_v35 = vsel %vm227_vm0, %v284_v30, 0.0  ;;  %v293_v38 = vsel %vm227_vm0, %v285_v34, 0.0 }
  0x46   : > { %v287_v41 = vrot.slane %v286_v35, 4  ;;  %v294_v44 = vrot.slane %v293_v38, 4  ;;  %p602_p6 = pnand %p601_p12, %p595_p3 }
  0x47   : > { %v234_v13 = vmax.f32 %v232_v9, %v233_v11  ;;  %v240_v14 = vrot.slane %v239_v12, 1 }
  0x48   : > { %v288_v47 = vadd.f32 %v287_v41, %v286_v35  ;;  %v295_v49 = vadd.f32 %v294_v44, %v293_v38 }
  0x49   : > { %v241_v15 = vmax.f32 %v239_v12, %v240_v14 }
  0x4a   : > { %v289_v50 = vrot.slane %v288_v47, 2  ;;  %v296_v51 = vrot.slane %v295_v49, 2 }
  0x4b   : > { %v244_v16 = vcombine.low %v234_v13, %v241_v15 }
  0x4c   : > { %v290_v52 = vadd.f32 %v289_v50, %v288_v47  ;;  %v297_v53 = vadd.f32 %v296_v51, %v295_v49 }
  0x4d   : > { %v246_v17 = vsub.f32 %v222_v0, %v244_v16 }
  0x4e   : > { %v291_v54 = vrot.slane %v290_v52, 1  ;;  %v298_v55 = vrot.slane %v297_v53, 1 }
  0x4f   : > { %v247_v19 = vmul.f32 1.442695, %v246_v17 }
  0x50   : > { %v292_v58 = vadd.f32 %v291_v54, %v290_v52  ;;  %v299_v62 = vadd.f32 %v298_v55, %v297_v53 }
  0x51   : > { %530 = vpow2.f32 %v247_v19 }
  0x5e   : > { %v531_v26 = vpop.eup %530 }
  0x5f   : > { %v250_v27 = vcombine.high %v531_v26, %v531_v26  ;;  %v252_v28 = vsel %vm227_vm0, %v531_v26, 0.0 }
  0x60   : > { %v253_v29 = vrot.slane %v252_v28, 4 }
  0x61   : > { %v259_v31 = vsel %vm227_vm0, %v250_v27, 0.0 }
  0x62   : > { %v254_v32 = vadd.f32 %v253_v29, %v252_v28  ;;  %v260_v33 = vrot.slane %v259_v31, 4 }
  0x64   : > { %v255_v36 = vrot.slane %v254_v32, 2  ;;  %v261_v37 = vadd.f32 %v260_v33, %v259_v31 }
  0x66   : > { %v256_v39 = vadd.f32 %v255_v36, %v254_v32  ;;  %v262_v40 = vrot.slane %v261_v37, 2 }
  0x68   : > { %v257_v42 = vrot.slane %v256_v39, 1  ;;  %v263_v43 = vadd.f32 %v262_v40, %v261_v37 }
  0x6a   : > { %v258_v45 = vadd.f32 %v257_v42, %v256_v39  ;;  %v264_v46 = vrot.slane %v263_v43, 1 }
  0x6c   : > { %v265_v48 = vadd.f32 %v264_v46, %v263_v43  ;;  %532 = vlog2.f32 %v258_v45 }
  0x6e   : > { %534 = vlog2.f32 %v265_v48 }
  0x79   : > { %v533_v56 = vpop.eup %532 }
  0x7a   : > { %v267_v57 = vmul.f32 0.6931472, %v533_v56 }
  0x7b   : > { %v535_v59 = vpop.eup %534 }
  0x7c   : > { %v269_v60 = vmul.f32 0.6931472, %v535_v59  ;;  %v270_v61 = vadd.f32 %v267_v57, %v234_v13 }
  0x7e   : > { %v271_v63 = vadd.f32 %v269_v60, %v241_v15  ;;  %v300_v0 = vsub.f32 %v270_v61, %v292_v58 }
  0x80   : > { %v301_v1 = vsub.f32 %v271_v63, %v299_v62  ;;  %v303_v2 = vsel %vm302_vm3, %v300_v0, 0.0 }
  0x82   : > { %v304_v3 = vsel %vm302_vm3, %v301_v1, 0.0 }
  0x83   : > { %v305_v4 = vadd.f32 %v304_v3, %v303_v2 }
  0x85   : > { %306 = vadd.xlane.f32.xlu0 %v305_v4 }
 0x10e   : > { %v307_v5 = vpop.xlane.xlu0 %306 }
 0x10f   : > { %v308_v6 = vrot.slane %v307_v5, 4 }
 0x111   : > { %v309_v7 = vadd.f32 %v308_v6, %v307_v5 }
 0x113   : > { %v310_v8 = vrot.slane %v309_v7, 2 }
 0x115   : > { %v311_v9 = vadd.f32 %v310_v8, %v309_v7 }
 0x117   : > { %v312_v10 = vrot.slane %v311_v9, 1 }
 0x119   : > { %v313_v11 = vadd.f32 %v312_v10, %v311_v9 }
 0x11b   : > { %460 = vpush %v313_v11 }
 0x14c   : > { %s461_s28 = spop %460 }
 0x14d   : > { %v315_v12 = vstv %s461_s28 }
 0x14e   : > { %316 = vst [vmem:[%s219_s21] sm:$0xff] %v315_v12 }
 0x14f   : > { %605 = shalt.err (!%p602_p6)
}
 0x150   : > { %s606_s15 = scalar_lea.hbm %s330_s7, 128  ;;  %s610_s19 = scalar_lea.hbm %s878_s2, 256 }
 0x151   : > { %p607_p7 = scmp.ne.s32.totalorder %s330_s7, %s606_s15  ;;  %p611_p4 = scmp.lt.s32.totalorder %s330_s7, %s878_s2 }
 0x152   : > { %p612_p10 = scmp.lt.s32.totalorder %s610_s19, %s606_s15 }
 0x153   : > { %p608_p1 = pnand %p607_p7, %p747_p9 }
 0x154   : > { %p613_p8 = por %p612_p10, %p611_p4 }
 0x155   : > { %p609_p2 = pneg %p608_p1 }
 0x157   : > { %p614_p0 = pnand %p613_p8, %p609_p2 }
 0x159   : > { %617 = shalt.err (!%p614_p0)
}
 0x15a   : > { %466 = dma.vmem_to_hbm [thread:$0]  (%p747_p9), %s831_s26, 128, %s330_s7, %s318_s8  }
 0x15b PF: > { %s344_s20 = sand.u32 1, %s656_s9   ;;  %p885_p3 = scmp.ge.s32.totalorder %s676_s14, 2 }
 0x15c   : > { %s345_s21 = scalar_lea.sflag [#allocation4], %s344_s20 }
 0x15d   : > { %p476_p13 = pnand %p885_p3, %p754_p11 }
 0x15f   : > { %p477_p5 = pneg %p476_p13 }
 0x161   : > { %651 = dma.done.wait (%p477_p5), %s345_s21, 128  }
 0x162   : > { %653 = vsyncadd (%p477_p5), %s345_s21, 4294967168  ;;  %s21_s14 = sadd.s32 1, %s676_s14   ;;  %s886_s9 = smov %s660_s10 }
 0x163   : > { %p18_p12 = scmp.ge.s32.totalorder %s21_s14, 4   ;;  %s887_s10 = smov %s664_s11 }
 0x164   : > { %s888_s11 = smov %s752_s23  ;;  %s889_s12 = smov %s672_s13 }
 0x165   : > { %s890_s13 = smov %s892_s17  ;;  %20 = sbr.rel (!%p18_p12) target bundleno = 8 (0x8), region = 86 }
 0x16a   :  { %350 = vsyncpa [#allocation3], 1 }
 0x16b   :  { %352 = vsyncpa [#allocation3 + $0x1], 1 }
 0x16c   :  { %353 = vsyncpa [#allocation6], 1 }
 0x16d   :  { %355 = vsyncpa [#allocation6 + $0x1], 1 }
 0x16e   :  { %356 = vsyncpa [#allocation4], 1 }
 0x16f   :  { %358 = vsyncpa [#allocation4 + $0x1], 1 }

</bundles_post_ra>
